<compile_context>
chip_gen: v6e
topology: v6e:2x2x1
jax: 0.10.0
libtpu: 0.0.40
codegen_flags: <defaults>
</compile_context>

<pallas_src>
import jax
import jax.numpy as jnp
from jax.experimental import pallas as pl
from jax.experimental.pallas import tpu as pltpu


def _round_up(n, m):
    return ((n + m - 1) // m) * m


def _disc_kernel(xt_ref, w1_ref, b1_ref, w2_ref, b2_ref, o_ref):
    # xt: (F_pad, bm)   w1: (H, F_pad)   b1: (H, 1)   w2: (H, 1)   b2: (1, 1)
    # o:  (1, 1, bm)  -- batch lives on the lane axis -> dense, unmasked stores.

    # Layer 1 (MXU, f32 accumulation; no explicit input cast): h^T = W1 @ x^T + b1
    h = jnp.dot(w1_ref[...], xt_ref[...], preferred_element_type=jnp.float32)
    h = h + b1_ref[...]                      # (H, bm) + (H, 1)

    # LeakyReLU(0.01) on the VPU.
    h = jnp.where(h > 0, h, 0.01 * h)

    # Layer 2: output width is 1, so skip the wasteful N=1 MXU matmul and use a
    # VPU multiply + cross-sublane reduce (XLU/VPU slots are otherwise idle).
    logits = jnp.sum(h * w2_ref[...], axis=0, keepdims=True) + b2_ref[...]   # (1, bm)

    # Sigmoid: exp on the EUP, approximate reciprocal on the EUP (~1e-4 rel err).
    sig = pl.reciprocal(1.0 + jnp.exp(-logits), approx=True)
    o_ref[0] = sig.astype(o_ref.dtype)


def discriminator_forward(x, w1, b1, w2, b2, *, block_m=512):
    """sigmoid(leaky_relu(x @ W1^T + b1, 0.01) @ W2^T + b2).

    Weights use the PyTorch nn.Linear layout:
      w1: (H, F)   b1: (H,)   w2: (1, H)   b2: (1,)
    Returns (B, 1) in x.dtype.
    """
    B, F = x.shape
    H = w1.shape[0]

    # ---- choose the batch tile: multiple of 128 so output stores are lane-dense,
    #      capped so the grid keeps >= 2 parallel steps when the batch allows it
    #      (v7x shards the parallel axis across its 2 TensorCores). -------------
    bm = _round_up(min(block_m, _round_up(B, 128)), 128)
    if _round_up(B, bm) // bm < 2 and bm > 128:
        bm = _round_up(bm // 2, 128)
    B_pad = _round_up(B, bm)
    nb = B_pad // bm

    # ---- pad K (features) to a multiple of 128 and lay the batch on lanes. ----
    F_pad = _round_up(F, 128)
    xt = jnp.zeros((F_pad, B_pad), x.dtype).at[:F, :B].set(x.T)     # (F_pad, B_pad)
    w1p = jnp.zeros((H, F_pad), w1.dtype).at[:, :F].set(w1)         # (H, F_pad)
    b1c = b1.reshape(H, 1)
    w2c = w2.reshape(H, 1)
    b2c = b2.reshape(1, 1)

    out = pl.pallas_call(
        _disc_kernel,
        out_shape=jax.ShapeDtypeStruct((nb, 1, bm), x.dtype),
        grid_spec=pltpu.PrefetchScalarGridSpec(
            num_scalar_prefetch=0,
            grid=(nb,),
            in_specs=[
                pl.BlockSpec((F_pad, bm), lambda i: (0, i)),   # x^T tile (streams)
                pl.BlockSpec((H, F_pad),  lambda i: (0, 0)),   # W1 (resident)
                pl.BlockSpec((H, 1),      lambda i: (0, 0)),   # b1
                pl.BlockSpec((H, 1),      lambda i: (0, 0)),   # W2 (as a column)
                pl.BlockSpec((1, 1),      lambda i: (0, 0)),   # b2
            ],
            out_specs=pl.BlockSpec((1, 1, bm), lambda i: (i, 0, 0)),
        ),
        compiler_params=pltpu.CompilerParams(
            dimension_semantics=("parallel",)),
    )(xt, w1p, b1c, w2c, b2c)

    # (nb, 1, bm) -> (B_pad,) -> drop batch padding -> (B, 1)
    return out.reshape(B_pad)[:B].reshape(B, 1)


def _reference(x, w1, b1, w2, b2):
    h = x @ w1.T + b1
    h = jnp.where(h > 0, h, 0.01 * h)
    return jax.nn.sigmoid(h @ w2.T + b2)


if __name__ == "__main__":
    key = jax.random.PRNGKey(0)
    IN_FEATURES, HIDDEN = 64, 128
    kx, k1, k2, k3, k4, kx2 = jax.random.split(key, 6)

    # Deterministic parameter init (PyTorch-Linear-style uniform bounds),
    # stored in PyTorch-native (out_features, in_features) layout.
    bound1 = 1.0 / (IN_FEATURES ** 0.5)
    w1 = jax.random.uniform(k1, (HIDDEN, IN_FEATURES), jnp.float32, -bound1, bound1)
    b1 = jax.random.uniform(k2, (HIDDEN,), jnp.float32, -bound1, bound1)
    bound2 = 1.0 / (HIDDEN ** 0.5)
    w2 = jax.random.uniform(k3, (1, HIDDEN), jnp.float32, -bound2, bound2)
    b2 = jax.random.uniform(k4, (1,), jnp.float32, -bound2, bound2)

    # Tolerance is 2e-3 (not 1e-5) only because of the approximate EUP
    # reciprocal in the sigmoid epilogue (~1e-4 relative error).
    TOL = 2e-3

    # Small shape (single grid step, batch padded 8 -> 128).
    x = jax.random.normal(kx, (8, IN_FEATURES), dtype=jnp.float32)
    out = jax.block_until_ready(discriminator_forward(x, w1, b1, w2, b2))
    ref = _reference(x, w1, b1, w2, b2)
    assert out.shape == (8, 1)
    assert jnp.allclose(out, ref, atol=TOL, rtol=TOL), "mismatch vs reference (B=8)"

    # Ragged batch: exercises batch padding and a 2-step parallel grid.
    x2 = jax.random.normal(kx2, (300, IN_FEATURES), dtype=jnp.float32)
    out2 = jax.block_until_ready(discriminator_forward(x2, w1, b1, w2, b2))
    ref2 = _reference(x2, w1, b1, w2, b2)
    assert out2.shape == (300, 1)
    assert jnp.allclose(out2, ref2, atol=TOL, rtol=TOL), "mismatch vs reference (B=300)"

    print("KERNEL_OK")
</pallas_src>

<mosaic_0001>
module attributes {stable_mosaic.version = 11 : i64} {
  func.func @_disc_kernel(%arg0: i32, %arg1: memref<128x128xf32, #tpu.memory_space<vmem>>, %arg2: memref<128x128xf32, #tpu.memory_space<vmem>>, %arg3: memref<128x1xf32, #tpu.memory_space<vmem>>, %arg4: memref<128x1xf32, #tpu.memory_space<vmem>>, %arg5: memref<1x1xf32, #tpu.memory_space<vmem>>, %arg6: memref<1x1x128xf32, #tpu.memory_space<vmem>>) attributes {dimension_semantics = [#tpu.dimension_semantics<parallel>], iteration_bounds = array<i64: 1>, scalar_prefetch = 0 : i64, scratch_operands = 0 : i64, tpu.core_type = #tpu.core_type<tc>, window_params = [{transform_indices = @transform_0, window_bounds = array<i64: 128, 128>}, {pipeline_mode = #tpu.pipeline_mode<synchronous>, transform_indices = @transform_1, window_bounds = array<i64: 128, 128>}, {pipeline_mode = #tpu.pipeline_mode<synchronous>, transform_indices = @transform_2, window_bounds = array<i64: 128, 1>}, {pipeline_mode = #tpu.pipeline_mode<synchronous>, transform_indices = @transform_3, window_bounds = array<i64: 128, 1>}, {pipeline_mode = #tpu.pipeline_mode<synchronous>, transform_indices = @transform_4, window_bounds = array<i64: 1, 1>}, {transform_indices = @transform_5, window_bounds = array<i64: 1, 1, 128>}]} {
    %c0 = arith.constant 0 : index
    %c0_0 = arith.constant 0 : index
    %0 = vector.load %arg2[%c0, %c0_0] : memref<128x128xf32, #tpu.memory_space<vmem>>, vector<128x128xf32>
    %c0_1 = arith.constant 0 : index
    %c0_2 = arith.constant 0 : index
    %1 = vector.load %arg1[%c0_1, %c0_2] : memref<128x128xf32, #tpu.memory_space<vmem>>, vector<128x128xf32>
    %cst = arith.constant dense<0.000000e+00> : vector<128x128xf32>
    %2 = tpu.matmul %0, %1, %cst {dimension_numbers = #tpu.dot_dimension_numbers<[1], [0], [0], [1], [0, 0, 1, 1], [], []>} : vector<128x128xf32>, vector<128x128xf32>, vector<128x128xf32> -> vector<128x128xf32>
    %c0_3 = arith.constant 0 : index
    %c0_4 = arith.constant 0 : index
    %3 = vector.load %arg3[%c0_3, %c0_4] : memref<128x1xf32, #tpu.memory_space<vmem>>, vector<128x1xf32>
    %4 = vector.broadcast %3 : vector<128x1xf32> to vector<128x128xf32>
    %5 = arith.addf %2, %4 : vector<128x128xf32>
    %cst_5 = arith.constant 0.000000e+00 : f32
    %6 = vector.broadcast %cst_5 : f32 to vector<128x128xf32>
    %7 = arith.cmpf ogt, %5, %6 : vector<128x128xf32>
    %cst_6 = arith.constant 0.00999999977 : f32
    %8 = vector.broadcast %cst_6 : f32 to vector<128x128xf32>
    %9 = arith.mulf %8, %5 : vector<128x128xf32>
    %10 = arith.select %7, %5, %9 : vector<128x128xi1>, vector<128x128xf32>
    %c0_7 = arith.constant 0 : index
    %c0_8 = arith.constant 0 : index
    %11 = vector.load %arg4[%c0_7, %c0_8] : memref<128x1xf32, #tpu.memory_space<vmem>>, vector<128x1xf32>
    %12 = vector.broadcast %11 : vector<128x1xf32> to vector<128x128xf32>
    %13 = arith.mulf %10, %12 : vector<128x128xf32>
    %cst_9 = arith.constant dense<0.000000e+00> : vector<128xf32>
    %14 = vector.multi_reduction <add>, %13, %cst_9 [0] : vector<128x128xf32> to vector<128xf32>
    %15 = vector.shape_cast %14 : vector<128xf32> to vector<1x128xf32>
    %c0_10 = arith.constant 0 : index
    %c0_11 = arith.constant 0 : index
    %16 = vector.load %arg5[%c0_10, %c0_11] : memref<1x1xf32, #tpu.memory_space<vmem>>, vector<1x1xf32>
    %17 = vector.broadcast %16 : vector<1x1xf32> to vector<1x128xf32>
    %18 = arith.addf %15, %17 : vector<1x128xf32>
    %cst_12 = arith.constant 0.000000e+00 : f32
    %19 = vector.broadcast %cst_12 : f32 to vector<1x128xf32>
    %20 = arith.subf %19, %18 : vector<1x128xf32>
    %21 = math.exp %20 : vector<1x128xf32>
    %cst_13 = arith.constant 1.000000e+00 : f32
    %22 = vector.broadcast %cst_13 : f32 to vector<1x128xf32>
    %23 = arith.addf %22, %21 : vector<1x128xf32>
    %24 = tpu.reciprocal %23 {approx = true} : vector<1x128xf32> -> vector<1x128xf32>
    %c0_14 = arith.constant 0 : index
    %c0_15 = arith.constant 0 : index
    %c0_16 = arith.constant 0 : index
    %25 = vector.load %arg6[%c0_14, %c0_15, %c0_16] : memref<1x1x128xf32, #tpu.memory_space<vmem>>, vector<1x1x128xf32>
    %26 = vector.shape_cast %25 : vector<1x1x128xf32> to vector<1x128xf32>
    %27 = vector.shape_cast %24 : vector<1x128xf32> to vector<1x1x128xf32>
    tpu.vector_store %arg6[%c0_14, %c0_15, %c0_16], %27 {strides = array<i32>} : memref<1x1x128xf32, #tpu.memory_space<vmem>>, vector<1x1x128xf32>,
    return
  }
  func.func @transform_0(%arg0: i32) -> (i32, i32) {
    %c0_i32 = arith.constant 0 : i32
    %c0_i32_0 = arith.constant 0 : i32
    return %c0_i32, %arg0 : i32, i32
  }
  func.func @transform_1(%arg0: i32) -> (i32, i32) {
    %c0_i32 = arith.constant 0 : i32
    %c0_i32_0 = arith.constant 0 : i32
    %c0_i32_1 = arith.constant 0 : i32
    return %c0_i32, %c0_i32_0 : i32, i32
  }
  func.func @transform_2(%arg0: i32) -> (i32, i32) {
    %c0_i32 = arith.constant 0 : i32
    %c0_i32_0 = arith.constant 0 : i32
    %c0_i32_1 = arith.constant 0 : i32
    return %c0_i32, %c0_i32_0 : i32, i32
  }
  func.func @transform_3(%arg0: i32) -> (i32, i32) {
    %c0_i32 = arith.constant 0 : i32
    %c0_i32_0 = arith.constant 0 : i32
    %c0_i32_1 = arith.constant 0 : i32
    return %c0_i32, %c0_i32_0 : i32, i32
  }
  func.func @transform_4(%arg0: i32) -> (i32, i32) {
    %c0_i32 = arith.constant 0 : i32
    %c0_i32_0 = arith.constant 0 : i32
    %c0_i32_1 = arith.constant 0 : i32
    return %c0_i32, %c0_i32_0 : i32, i32
  }
  func.func @transform_5(%arg0: i32) -> (i32, i32, i32) {
    %c0_i32 = arith.constant 0 : i32
    %c0_i32_0 = arith.constant 0 : i32
    %c0_i32_1 = arith.constant 0 : i32
    return %arg0, %c0_i32, %c0_i32_0 : i32, i32, i32
  }
}

</mosaic_0001>

<bundles_post_ra>
// kernel: tpu_custom_call.1
= control target key start
LH: loop header
LB: loop body
LE: loop exit
PB: predicated region body
PF: predicated region fallthrough
CT: control target
= control target key end

     0   :  { %s906_s0 = inlined_call_operand.vmem [shape: f32[128,128], index: 0, kind: input, shape index: {}]   ;;  %s907_s1 = inlined_call_operand.vmem [shape: f32[128,128], index: 1, kind: input, shape index: {}]   ;;  %s908_s2 = inlined_call_operand.vmem [shape: f32[128,1], index: 2, kind: input, shape index: {}]   ;;  %s909_s3 = inlined_call_operand.vmem [shape: f32[128,1], index: 3, kind: input, shape index: {}]   ;;  %s910_s4 = inlined_call_operand.<no memory space> [shape: f32[1,1], index: 4, kind: input, shape index: {}]   ;;  %s911_s5 = inlined_call_operand.hbm [shape: f32[1,1,128], index: 5, kind: output, shape index: {}]  }
   0x1   :  { %v10_v0 = vstv %s910_s4 }
   0x2   :  { %11 = vst [vmem:[#allocation2] sm:$0x1] %v10_v0 }
   0x3   :  { %v54_v1 = vld [vmem:[%s906_s0 + $0x78] sm:$0xff]  ;;  %v53_v2 = vld [vmem:[%s906_s0 + $0x70] sm:$0xff]  ;;  %v52_v3 = vld [vmem:[%s906_s0 + $0x68] sm:$0xff]  ;;  %v658_v9 = vmov 0  }
   0x4   :  { %540 = vmatprep.subr.mxu0 %v54_v1  ;;  %596 = vmatprep.subr.mxu1 %v54_v1  ;;  %v51_v4 = vld [vmem:[%s906_s0 + $0x60] sm:$0xff]  ;;  %v50_v5 = vld [vmem:[%s906_s0 + $0x58] sm:$0xff]  ;;  %v49_v6 = vld [vmem:[%s906_s0 + $0x50] sm:$0xff] }
   0x5   :  { %541 = vmatpush3.msra.mxu0 %v54_v1  ;;  %612 = vmatpush3.msra.mxu1 %v54_v1  ;;  %v55_v7 = vld [vmem:[%s908_s2] sm:$0xff]  ;;  %v48_v8 = vld [vmem:[%s906_s0 + $0x48] sm:$0xff]  ;;  %v46_v12 = vld [vmem:[%s906_s0 + $0x38] sm:$0xff] }
   0x6   :  { %542 = vmatprep.subr.mxu0 %v53_v2  ;;  %597 = vmatprep.subr.mxu1 %v53_v2  ;;  %v47_v10 = vld [vmem:[%s906_s0 + $0x40] sm:$0xff]  ;;  %v56_v11 = vld [vmem:[%s908_s2 + $0x8] sm:$0xff]  ;;  %v57_v13 = vld [vmem:[%s908_s2 + $0x10] sm:$0xff] }
   0x7   :  { %543 = vmatpush3.msra.mxu0 %v53_v2  ;;  %613 = vmatpush3.msra.mxu1 %v53_v2  ;;  %v45_v14 = vld [vmem:[%s906_s0 + $0x30] sm:$0xff]  ;;  %v344_v15 = vld [vmem:[%s909_s3] sm:$0xff]  ;;  %v44_v16 = vld [vmem:[%s906_s0 + $0x28] sm:$0xff] }
   0x8   :  { %544 = vmatprep.subr.mxu0 %v52_v3  ;;  %598 = vmatprep.subr.mxu1 %v52_v3 }
   0x9   :  { %545 = vmatpush3.msra.mxu0 %v52_v3  ;;  %614 = vmatpush3.msra.mxu1 %v52_v3 }
   0xa   :  { %546 = vmatprep.subr.mxu0 %v51_v4  ;;  %599 = vmatprep.subr.mxu1 %v51_v4 }
   0xb   :  { %547 = vmatpush3.msra.mxu0 %v51_v4  ;;  %615 = vmatpush3.msra.mxu1 %v51_v4 }
   0xc   :  { %548 = vmatprep.subr.mxu0 %v50_v5  ;;  %600 = vmatprep.subr.mxu1 %v50_v5 }
   0xd   :  { %549 = vmatpush3.msra.mxu0 %v50_v5  ;;  %616 = vmatpush3.msra.mxu1 %v50_v5 }
   0xe   :  { %550 = vmatprep.subr.mxu0 %v49_v6  ;;  %601 = vmatprep.subr.mxu1 %v49_v6 }
   0xf   :  { %630 = vset.pattern.permute.xlu0 %v658_v9  ;;  %551 = vmatpush3.msra.mxu0 %v49_v6 }
  0x10   :  { %617 = vmatpush3.msra.mxu1 %v49_v6  ;;  %73 = vperm.xlu0 %630, %v55_v7  }
  0x11   :  { %552 = vmatprep.subr.mxu0 %v48_v8  ;;  %602 = vmatprep.subr.mxu1 %v48_v8 }
  0x12   :  { %553 = vmatpush3.msra.mxu0 %v48_v8  ;;  %618 = vmatpush3.msra.mxu1 %v48_v8 }
  0x13   :  { %554 = vmatprep.subr.mxu0 %v47_v10  ;;  %603 = vmatprep.subr.mxu1 %v47_v10 }
  0x14   :  { %555 = vmatpush3.msra.mxu0 %v47_v10  ;;  %619 = vmatpush3.msra.mxu1 %v47_v10 }
  0x15   :  { %78 = vperm.xlu0 %630, %v56_v11   ;;  %556 = vmatprep.subr.mxu0 %v46_v12 }
  0x16   :  { %604 = vmatprep.subr.mxu1 %v46_v12  ;;  %631 = vset.pattern.permute.xlu1 %v658_v9 }
  0x17   :  { %557 = vmatpush3.msra.mxu0 %v46_v12  ;;  %620 = vmatpush3.msra.mxu1 %v46_v12 }
  0x18   :  { %83 = vperm.xlu1 %631, %v57_v13   ;;  %558 = vmatprep.subr.mxu0 %v45_v14 }
  0x19   :  { %12 = vsyncpa [#allocation4], 0  ;;  %605 = vmatprep.subr.mxu1 %v45_v14  ;;  %559 = vmatpush3.msra.mxu0 %v45_v14  ;;  %v58_v17 = vld [vmem:[%s908_s2 + $0x18] sm:$0xff]  ;;  %v43_v18 = vld [vmem:[%s906_s0 + $0x20] sm:$0xff] }
  0x1a   :  { %621 = vmatpush3.msra.mxu1 %v45_v14  ;;  %362 = vperm.xlu0 %630, %v344_v15   ;;  %v59_v19 = vld [vmem:[%s908_s2 + $0x20] sm:$0xff]  ;;  %v42_v20 = vld [vmem:[%s906_s0 + $0x18] sm:$0xff]  ;;  %v345_v21 = vld [vmem:[%s909_s3 + $0x8] sm:$0xff] }
  0x1b   :  { %560 = vmatprep.subr.mxu0 %v44_v16  ;;  %606 = vmatprep.subr.mxu1 %v44_v16  ;;  %v41_v22 = vld [vmem:[%s906_s0 + $0x10] sm:$0xff]  ;;  %v60_v23 = vld [vmem:[%s908_s2 + $0x28] sm:$0xff]  ;;  %v39_v26 = vld [vmem:[%s906_s0] sm:$0xff] }
  0x1c   :  { %561 = vmatpush3.msra.mxu0 %v44_v16  ;;  %622 = vmatpush3.msra.mxu1 %v44_v16  ;;  %v40_v24 = vld [vmem:[%s906_s0 + $0x8] sm:$0xff]  ;;  %v346_v25 = vld [vmem:[%s909_s3 + $0x10] sm:$0xff]  ;;  %v23_v27 = vld [vmem:[%s907_s1] sm:$0xff] }
  0x1d   :  { %88 = vperm.xlu1 %631, %v58_v17   ;;  %562 = vmatprep.subr.mxu0 %v43_v18  ;;  %v31_v28 = vld [vmem:[%s907_s1 + $0x40] sm:$0xff]  ;;  %v61_v29 = vld [vmem:[%s908_s2 + $0x30] sm:$0xff]  ;;  %v24_v30 = vld [vmem:[%s907_s1 + $0x8] sm:$0xff] }
  0x1e   :  { %607 = vmatprep.subr.mxu1 %v43_v18  ;;  %563 = vmatpush3.msra.mxu0 %v43_v18  ;;  %v32_v31 = vld [vmem:[%s907_s1 + $0x48] sm:$0xff]  ;;  %v347_v32 = vld [vmem:[%s909_s3 + $0x18] sm:$0xff]  ;;  %v25_v33 = vld [vmem:[%s907_s1 + $0x10] sm:$0xff] }
  0x1f   :  { %623 = vmatpush3.msra.mxu1 %v43_v18  ;;  %93 = vperm.xlu0 %630, %v59_v19   ;;  %v33_v34 = vld [vmem:[%s907_s1 + $0x50] sm:$0xff]  ;;  %v62_v35 = vld [vmem:[%s908_s2 + $0x38] sm:$0xff]  ;;  %v348_v38 = vld [vmem:[%s909_s3 + $0x20] sm:$0xff] }
  0x20   :  { %564 = vmatprep.subr.mxu0 %v42_v20  ;;  %608 = vmatprep.subr.mxu1 %v42_v20  ;;  %v26_v36 = vld [vmem:[%s907_s1 + $0x18] sm:$0xff]  ;;  %v27_v39 = vld [vmem:[%s907_s1 + $0x20] sm:$0xff]  ;;  %v28_v42 = vld [vmem:[%s907_s1 + $0x28] sm:$0xff] }
  0x21   :  { %565 = vmatpush3.msra.mxu0 %v42_v20  ;;  %624 = vmatpush3.msra.mxu1 %v42_v20  ;;  %v34_v37 = vld [vmem:[%s907_s1 + $0x58] sm:$0xff]  ;;  %v35_v40 = vld [vmem:[%s907_s1 + $0x60] sm:$0xff]  ;;  %v36_v43 = vld [vmem:[%s907_s1 + $0x68] sm:$0xff] }
  0x22   :  { %367 = vperm.xlu1 %631, %v345_v21   ;;  %566 = vmatprep.subr.mxu0 %v41_v22  ;;  %v63_v41 = vld [vmem:[%s908_s2 + $0x40] sm:$0xff]  ;;  %v349_v44 = vld [vmem:[%s909_s3 + $0x28] sm:$0xff]  ;;  %v29_v45 = vld [vmem:[%s907_s1 + $0x30] sm:$0xff] }
  0x23   :  { %609 = vmatprep.subr.mxu1 %v41_v22  ;;  %567 = vmatpush3.msra.mxu0 %v41_v22  ;;  %v37_v46 = vld [vmem:[%s907_s1 + $0x70] sm:$0xff]  ;;  %v64_v47 = vld [vmem:[%s908_s2 + $0x48] sm:$0xff]  ;;  %v30_v48 = vld [vmem:[%s907_s1 + $0x38] sm:$0xff] }
  0x24   :  { %625 = vmatpush3.msra.mxu1 %v41_v22  ;;  %98 = vperm.xlu0 %630, %v60_v23   ;;  %v38_v49 = vld [vmem:[%s907_s1 + $0x78] sm:$0xff]  ;;  %v350_v50 = vld [vmem:[%s909_s3 + $0x30] sm:$0xff]  ;;  %v352_v54 = vld [vmem:[%s909_s3 + $0x40] sm:$0xff] }
  0x25   :  { %568 = vmatprep.subr.mxu0 %v40_v24  ;;  %610 = vmatprep.subr.mxu1 %v40_v24  ;;  %v65_v51 = vld [vmem:[%s908_s2 + $0x50] sm:$0xff]  ;;  %v351_v52 = vld [vmem:[%s909_s3 + $0x38] sm:$0xff]  ;;  %v67_v55 = vld [vmem:[%s908_s2 + $0x60] sm:$0xff] }
  0x26   :  { %569 = vmatpush3.msra.mxu0 %v40_v24  ;;  %626 = vmatpush3.msra.mxu1 %v40_v24  ;;  %v66_v53 = vld [vmem:[%s908_s2 + $0x58] sm:$0xff]  ;;  %v353_v56 = vld [vmem:[%s909_s3 + $0x48] sm:$0xff]  ;;  %v354_v58 = vld [vmem:[%s909_s3 + $0x50] sm:$0xff] }
  0x27   :  { %372 = vperm.xlu1 %631, %v346_v25   ;;  %570 = vmatprep.subr.mxu0 %v39_v26  ;;  %v68_v57 = vld [vmem:[%s908_s2 + $0x68] sm:$0xff]  ;;  %v69_v59 = vld [vmem:[%s908_s2 + $0x70] sm:$0xff]  ;;  %v355_v60 = vld [vmem:[%s909_s3 + $0x58] sm:$0xff] }
  0x28   :  { %611 = vmatprep.subr.mxu1 %v39_v26  ;;  %571 = vmatpush3.msra.mxu0 %v39_v26  ;;  %v70_v61 = vld [vmem:[%s908_s2 + $0x78] sm:$0xff]  ;;  %v356_v62 = vld [vmem:[%s909_s3 + $0x60] sm:$0xff]  ;;  %v358_v63 = vld [vmem:[%s909_s3 + $0x70] sm:$0xff] }
  0x29   :  { %627 = vmatpush3.msra.mxu1 %v39_v26  ;;  %572 = vmatprep.mubr.f32.mxu0 %v23_v27  ;;  %v357_v0 = vld [vmem:[%s909_s3 + $0x68] sm:$0xff]  ;;  %v477_v1 = vld [vmem:[#allocation2] sm:$0x1]  ;;  %v359_v2 = vld [vmem:[%s909_s3 + $0x78] sm:$0xff]  ;;  %s659_s3 = smov [#allocation3]  }
  0x2a   :  { %584 = vmatprep.mubr.f32.mxu1 %v31_v28  ;;  %103 = vperm.xlu0 %630, %v61_v29   ;;  %s500_s13 = sshll.u32 %s659_s3, 4  ;;  %s501_s13 = int_to_ptr.vmem [resolvable:$true] %s500_s13 }
  0x2b   :  { %573 = vmatmul.mubr.f32.vlgmr.msra.gmra.mxu0 %v24_v30  ;;  %585 = vmatmul.mubr.f32.vlgmr.msra.gmra.mxu1 %v32_v31  ;;  %s636_s14 = scalar_lea.vmem %s501_s13, 16  ;;  %s640_s15 = scalar_lea.vmem %s501_s13, 32 }
  0x2c   :  { %377 = vperm.xlu1 %631, %v347_v32   ;;  %575 = vmatprep.mubr.f32.mxu0 %v25_v33  ;;  %p637_p0 = scmp.ne.s32.totalorder %s501_s13, %s636_s14  ;;  %p641_p1 = scmp.lt.s32.totalorder %s501_s13, %s501_s13 }
  0x2d   :  { %587 = vmatprep.mubr.f32.mxu1 %v33_v34  ;;  %p642_p2 = scmp.lt.s32.totalorder %s640_s15, %s636_s14 }
  0x2e   :  { %108 = vperm.xlu0 %630, %v62_v35  }
  0x2f   :  { %576 = vmatmul.mubr.f32.gmra.mxu0 %v26_v36  ;;  %588 = vmatmul.mubr.f32.gmra.mxu1 %v34_v37  ;;  %p643_p3 = por %p642_p2, %p641_p1 }
  0x30   :  { %382 = vperm.xlu1 %631, %v348_v38   ;;  %578 = vmatprep.mubr.f32.mxu0 %v27_v39 }
  0x31   :  { %590 = vmatprep.mubr.f32.mxu1 %v35_v40  ;;  %p644_p4 = pnand %p643_p3, %p637_p0 }
  0x32   :  { %113 = vperm.xlu0 %630, %v63_v41  }
  0x33   :  { %579 = vmatmul.mubr.f32.gmra.mxu0 %v28_v42  ;;  %591 = vmatmul.mubr.f32.gmra.mxu1 %v36_v43 }
  0x34   :  { %387 = vperm.xlu1 %631, %v349_v44   ;;  %581 = vmatprep.mubr.f32.mxu0 %v29_v45 }
  0x35   :  { %593 = vmatprep.mubr.f32.mxu1 %v37_v46 }
  0x36   :  { %118 = vperm.xlu0 %630, %v64_v47  }
  0x37   :  { %582 = vmatmul.mubr.f32.gmra.mxu0 %v30_v48  ;;  %594 = vmatmul.mubr.f32.gmra.mxu1 %v38_v49 }
  0x38   :  { %392 = vperm.xlu1 %631, %v350_v50  }
  0x3a   :  { %123 = vperm.xlu0 %630, %v65_v51  }
  0x3c   :  { %397 = vperm.xlu1 %631, %v351_v52  }
  0x3e   :  { %128 = vperm.xlu0 %630, %v66_v53  }
  0x40   :  { %402 = vperm.xlu1 %631, %v352_v54  }
  0x42   :  { %133 = vperm.xlu0 %630, %v67_v55  }
  0x44   :  { %407 = vperm.xlu1 %631, %v353_v56  }
  0x46   :  { %138 = vperm.xlu0 %630, %v68_v57  }
  0x48   :  { %412 = vperm.xlu1 %631, %v354_v58  }
  0x4a   :  { %143 = vperm.xlu0 %630, %v69_v59  }
  0x4c   :  { %417 = vperm.xlu1 %631, %v355_v60  }
  0x4e   :  { %148 = vperm.xlu0 %630, %v70_v61  }
  0x50   :  { %422 = vperm.xlu1 %631, %v356_v62  }
  0x52   :  { %432 = vperm.xlu0 %630, %v358_v63  }
  0x54   :  { %427 = vperm.xlu1 %631, %v357_v0  }
  0x56   :  { %480 = vperm.xlu0 %630, %v477_v1  }
  0x58   :  { %437 = vperm.xlu1 %631, %v359_v2  }
  0x8b   :  { %v74_v3 = vpop.permute.xlu0 %73 }
  0x90   :  { %v79_v5 = vpop.permute.xlu0 %78 }
  0x93   :  { %v84_v4 = vpop.permute.xlu1 %83 }
  0x95   :  { %v363_v7 = vpop.permute.xlu0 %362 }
  0x98   :  { %v89_v6 = vpop.permute.xlu1 %88 }
  0x9a   :  { %v94_v9 = vpop.permute.xlu0 %93 }
  0x9d   :  { %v368_v8 = vpop.permute.xlu1 %367 }
  0x9f   :  { %v99_v11 = vpop.permute.xlu0 %98 }
  0xa2   :  { %v373_v10 = vpop.permute.xlu1 %372 }
  0xa5   :  { %v885_v13 = vpop.permute.xlu0 %103 }
  0xa7   :  { %v378_v12 = vpop.permute.xlu1 %377 }
  0xa9   :  { %v109_v15 = vpop.permute.xlu0 %108 }
  0xab   :  { %v383_v14 = vpop.permute.xlu1 %382 }
  0xad   :  { %v114_v17 = vpop.permute.xlu0 %113 }
  0xaf   :  { %v887_v16 = vpop.permute.xlu1 %387 }
  0xb1   :  { %v119_v19 = vpop.permute.xlu0 %118 }
  0xb3   :  { %v889_v18 = vpop.permute.xlu1 %392 }
  0xb5   :  { %v124_v23 = vpop.permute.xlu0 %123 }
  0xb7   :  { %v891_v20 = vpop.permute.xlu1 %397 }
  0xb9   :  { %v129_v34 = vpop.permute.xlu0 %128 }
  0xbb   :  { %v893_v31 = vpop.permute.xlu1 %402 }
  0xbd   :  { %v134_v49 = vpop.permute.xlu0 %133 }
  0xbf   :  { %v895_v45 = vpop.permute.xlu1 %407 }
  0xc3   :  { %v413_v62 = vpop.permute.xlu1 %412 }
  0xeb   :  { %v574_v21 = vpop.f32.mrf.mxu0  ;;  %v586_v22 = vpop.f32.mrf.mxu1 }
  0xec   :  { %v223_v24 = vadd.f32 %v574_v21, %v79_v5 }
  0xed   :  { %v217_v25 = vpop.f32.mrf.mxu0  ;;  %v257_v26 = vpop.f32.mrf.mxu1 }
  0xee   :  { %v218_v27 = vadd.f32 %v217_v25, %v74_v3  ;;  %v313_v29 = vmul.f32 0.01, %v223_v24  ;;  %vm297_vm0 = vcmp.gt.f32.partialorder %v223_v24, 0.0  ;;  %v258_v63 = vadd.f32 %v257_v26, %v114_v17  ;;  %v139_v3 = vpop.permute.xlu0 %138 }
  0xef   :  { %v577_v28 = vpop.f32.mrf.mxu0  ;;  %v589_v35 = vpop.f32.mrf.mxu1 }
  0xf0   :  { %v233_v30 = vadd.f32 %v577_v28, %v89_v6  ;;  %vm296_vm1 = vcmp.gt.f32.partialorder %v218_v27, 0.0  ;;  %v312_v32 = vmul.f32 0.01, %v218_v27  ;;  %v329_v39 = vsel %vm297_vm0, %v223_v24, %v313_v29  ;;  %v418_v24 = vpop.permute.xlu1 %417 }
  0xf1   :  { %v227_v33 = vpop.f32.mrf.mxu0  ;;  %v267_v44 = vpop.f32.mrf.mxu1  ;;  %v441_v46 = vmul.f32 %v368_v8, %v329_v39  ;;  %v263_v6 = vadd.f32 %v586_v22, %v119_v19  ;;  %vm304_vm8 = vcmp.gt.f32.partialorder %v258_v63, 0.0  ;;  %v273_v26 = vadd.f32 %v589_v35, %v129_v34 }
  0xf2   :  { %v328_v36 = vsel %vm296_vm1, %v218_v27, %v312_v32  ;;  %v228_v37 = vadd.f32 %v227_v33, %v84_v4  ;;  %v315_v40 = vmul.f32 0.01, %v233_v30  ;;  %vm299_vm2 = vcmp.gt.f32.partialorder %v233_v30, 0.0  ;;  %v144_v19 = vpop.permute.xlu0 %143 }
  0xf3   :  { %v580_v38 = vpop.f32.mrf.mxu0  ;;  %v440_v41 = vmul.f32 %v363_v7, %v328_v36  ;;  %v592_v56 = vpop.f32.mrf.mxu1  ;;  %v321_v25 = vmul.f32 0.01, %v263_v6  ;;  %vm305_vm9 = vcmp.gt.f32.partialorder %v263_v6, 0.0  ;;  %v323_v33 = vmul.f32 0.01, %v273_v26 }
  0xf4   :  { %vm298_vm3 = vcmp.gt.f32.partialorder %v228_v37, 0.0  ;;  %v314_v43 = vmul.f32 0.01, %v228_v37  ;;  %v243_v47 = vadd.f32 %v580_v38, %v99_v11  ;;  %v331_v50 = vsel %vm299_vm2, %v233_v30, %v315_v40  ;;  %v423_v35 = vpop.permute.xlu1 %422 }
  0xf5   :  { %v237_v42 = vpop.f32.mrf.mxu0  ;;  %v456_v53 = vadd.f32 %v441_v46, %v440_v41  ;;  %v443_v57 = vmul.f32 %v378_v12, %v331_v50  ;;  %v277_v5 = vpop.f32.mrf.mxu1  ;;  %v320_v11 = vmul.f32 0.01, %v258_v63  ;;  %v268_v12 = vadd.f32 %v267_v44, %v124_v23 }
  0xf6   :  { %v238_v48 = vadd.f32 %v237_v42, %v94_v9  ;;  %v330_v51 = vsel %vm298_vm3, %v228_v37, %v314_v43  ;;  %v317_v55 = vmul.f32 0.01, %v243_v47  ;;  %vm301_vm4 = vcmp.gt.f32.partialorder %v243_v47, 0.0 }
  0xf7   :  { %v583_v52 = vpop.f32.mrf.mxu0  ;;  %v442_v54 = vmul.f32 %v373_v10, %v330_v51  ;;  %v595_v17 = vpop.f32.mrf.mxu1  ;;  %v336_v22 = vsel %vm304_vm8, %v258_v63, %v320_v11  ;;  %v278_v28 = vadd.f32 %v277_v5, %v134_v49  ;;  %vm306_vm10 = vcmp.gt.f32.partialorder %v268_v12, 0.0 }
  0xf8   :  { %vm300_vm5 = vcmp.gt.f32.partialorder %v238_v48, 0.0  ;;  %v316_v59 = vmul.f32 0.01, %v238_v48  ;;  %v253_v60 = vadd.f32 %v583_v52, %v109_v15  ;;  %v333_v0 = vsel %vm301_vm4, %v243_v47, %v317_v55  ;;  %v428_v51 = vpop.permute.xlu1 %427 }
  0xf9   :  { %v457_v58 = vadd.f32 %v456_v53, %v442_v54  ;;  %v247_v61 = vpop.f32.mrf.mxu0  ;;  %v445_v9 = vmul.f32 %v887_v16, %v333_v0  ;;  %v322_v16 = vmul.f32 0.01, %v268_v12  ;;  %v287_v30 = vpop.f32.mrf.mxu1  ;;  %v337_v32 = vsel %vm305_vm9, %v263_v6, %v321_v25 }
  0xfa   :  { %v332_v1 = vsel %vm300_vm5, %v238_v48, %v316_v59  ;;  %v319_v7 = vmul.f32 0.01, %v253_v60  ;;  %v248_v8 = vadd.f32 %v247_v61, %v885_v13  ;;  %vm303_vm6 = vcmp.gt.f32.partialorder %v253_v60, 0.0 }
  0xfb   :  { %v458_v2 = vadd.f32 %v457_v58, %v443_v57  ;;  %v444_v4 = vmul.f32 %v383_v14, %v332_v1  ;;  %v283_v36 = vadd.f32 %v592_v56, %v139_v3  ;;  %v448_v37 = vmul.f32 %v893_v31, %v336_v22 }
  0xfc   :  { %vm302_vm7 = vcmp.gt.f32.partialorder %v248_v8, 0.0  ;;  %v318_v15 = vmul.f32 0.01, %v248_v8  ;;  %v335_v14 = vsel %vm303_vm6, %v253_v60, %v319_v7  ;;  %vm307_vm11 = vcmp.gt.f32.partialorder %v273_v26, 0.0 }
  0xfd   :  { %v459_v10 = vadd.f32 %v458_v2, %v444_v4  ;;  %v447_v23 = vmul.f32 %v891_v20, %v335_v14  ;;  %v338_v38 = vsel %vm306_vm10, %v268_v12, %v322_v16  ;;  %v324_v39 = vmul.f32 0.01, %v278_v28 }
  0xfe   :  { %v334_v27 = vsel %vm302_vm7, %v248_v8, %v318_v15  ;;  %v288_v40 = vadd.f32 %v287_v30, %v144_v19  ;;  %v449_v41 = vmul.f32 %v895_v45, %v337_v32  ;;  %vm308_vm12 = vcmp.gt.f32.partialorder %v278_v28, 0.0 }
  0xff   :  { %v460_v21 = vadd.f32 %v459_v10, %v445_v9  ;;  %v446_v13 = vmul.f32 %v889_v18, %v334_v27  ;;  %v149_v18 = vpop.permute.xlu0 %148  ;;  %v339_v43 = vsel %vm307_vm11, %v273_v26, %v323_v33  ;;  %v325_v20 = vmul.f32 0.01, %v283_v36 }
 0x100   :  { %v293_v44 = vadd.f32 %v595_v17, %v149_v18  ;;  %v450_v46 = vmul.f32 %v413_v62, %v338_v38  ;;  %vm309_vm13 = vcmp.gt.f32.partialorder %v283_v36, 0.0  ;;  %v340_v48 = vsel %vm308_vm12, %v278_v28, %v324_v39  ;;  %v438_v62 = vpop.permute.xlu1 %437 }
 0x101   :  { %v461_v29 = vadd.f32 %v460_v21, %v446_v13  ;;  %v326_v49 = vmul.f32 0.01, %v288_v40  ;;  %v451_v31 = vmul.f32 %v418_v24, %v339_v43  ;;  %vm310_vm14 = vcmp.gt.f32.partialorder %v288_v40, 0.0 }
 0x102   :  { %v341_v52 = vsel %vm309_vm13, %v283_v36, %v325_v20  ;;  %v327_v53 = vmul.f32 0.01, %v293_v44  ;;  %v452_v54 = vmul.f32 %v423_v35, %v340_v48  ;;  %vm311_vm15 = vcmp.gt.f32.partialorder %v293_v44, 0.0 }
 0x103   :  { %v462_v34 = vadd.f32 %v461_v29, %v447_v23  ;;  %v342_v45 = vsel %vm310_vm14, %v288_v40, %v326_v49  ;;  %v453_v56 = vmul.f32 %v428_v51, %v341_v52  ;;  %v433_v58 = vpop.permute.xlu0 %432  ;;  %v483_v1 = vlaneseq }
 0x104   :  { %v343_v59 = vsel %vm311_vm15, %v293_v44, %v327_v53  ;;  %v454_v60 = vmul.f32 %v433_v58, %v342_v45 }
 0x105   :  { %v463_v42 = vadd.f32 %v462_v34, %v448_v37  ;;  %v455_v63 = vmul.f32 %v438_v62, %v343_v59  ;;  %v484_v4 = vshrl.u32 %v483_v1, 7 }
 0x107   :  { %v464_v47 = vadd.f32 %v463_v42, %v449_v41  ;;  %v485_v7 = vsub.s32 0, %v484_v4  ;;  %v481_v9 = vpop.permute.xlu0 %480 }
 0x109   :  { %v465_v50 = vadd.f32 %v464_v47, %v450_v46  ;;  %v486_v11 = vrot.slane %v481_v9, %v485_v7 }
 0x10b   :  { %v466_v55 = vadd.f32 %v465_v50, %v451_v31 }
 0x10d   :  { %v467_v57 = vadd.f32 %v466_v55, %v452_v54 }
 0x10f   :  { %v468_v61 = vadd.f32 %v467_v57, %v453_v56 }
 0x111   :  { %v469_v0 = vadd.f32 %v468_v61, %v454_v60 }
 0x113   :  { %v470_v2 = vadd.f32 %v469_v0, %v455_v63 }
 0x115   :  { %v471_v3 = vrot.slane %v470_v2, 4 }
 0x117   :  { %v472_v5 = vadd.f32 %v471_v3, %v470_v2 }
 0x119   :  { %v473_v6 = vrot.slane %v472_v5, 2 }
 0x11b   :  { %v474_v8 = vadd.f32 %v473_v6, %v472_v5 }
 0x11d   :  { %v475_v10 = vrot.slane %v474_v8, 1 }
 0x11f   :  { %v476_v12 = vadd.f32 %v475_v10, %v474_v8 }
 0x121   :  { %v487_v15 = vadd.f32 %v486_v11, %v476_v12 }
 0x123   :  { %v488_v17 = vsub.f32 0.0, %v487_v15 }
 0x125   :  { %v489_v21 = vmul.f32 1.442695, %v488_v17 }
 0x127   :  { %632 = vpow2.f32 %v489_v21 }
 0x134   :  { %v633_v24 = vpop.eup %632 }
 0x135   :  { %v491_v25 = vadd.f32 1.0, %v633_v24 }
 0x137   :  { %634 = vrcp.f32 %v491_v25 }
 0x144   :  { %v635_v26 = vpop.eup %634 }
 0x145   :  { %493 = vst [vmem:[#allocation3] sm:$0x1] %v635_v26 }
 0x146   :  { %647 = shalt.err (!%p644_p4)
}
 0x147   :  { %503 = dma.vmem_to_hbm [thread:$0]  %s501_s13, 16, %s911_s5, [#allocation4]  }
 0x148   :  { %656 = dma.done.wait [#allocation4], 16  }
 0x149   :  { %657 = vsyncadd [#allocation4], 4294967280 }
 0x14a   :  { %507 = vsyncpa [#allocation4], 1 }

</bundles_post_ra>
